<compile_context>
chip_gen: v7x
topology: tpu7x:2x2x1
jax: 0.10.0
libtpu: 0.0.40
codegen_flags: <defaults>
</compile_context>

<pallas_src>
import jax
import jax.numpy as jnp
from jax.experimental import pallas as pl
from jax.experimental.pallas import tpu as pltpu


def _round_up(n, m):
    return ((n + m - 1) // m) * m


def _bf16_valu_available():
    """bf16 VALU exists on v6e/v7x; older gens (<= v5) would emulate bf16 elementwise."""
    try:
        kind = jax.devices()[0].device_kind.lower()
    except Exception:
        return True
    return not any(old in kind for old in ("v2", "v3", "v4", "v5"))


def pack_params(params, window, class_num, use_bf16=True):
    """Fold depthwise+pointwise convs into im2col matmul weights and pack everything into
    one bf16 weight slab + one small f32 bias slab (each DMA'd once, VMEM-resident)."""
    f32 = jnp.float32
    K1, S1, P1 = 8, 2, 3
    K2, S2, P2 = 8, 4, 2
    W = window
    L1 = (W + 2 * P1 - K1) // S1 + 1
    L2 = (L1 + 2 * P2 - K2) // S2 + 1
    # Linear(64, 64) after Flatten requires the conv stack to collapse length to 1.
    assert L2 == 1, "window must make the 2nd SepConv1d output length 1 (window in [8, 15])"

    dw1_w = params["dw1_w"].astype(f32)               # (C0, 8)
    dw1_b = params["dw1_b"].reshape(-1).astype(f32)   # (C0,)
    pw1_w = params["pw1_w"].astype(f32)               # (32, C0)
    pw1_b = params["pw1_b"].reshape(-1).astype(f32)   # (32,)
    dw2_w = params["dw2_w"].astype(f32)               # (32, 8)
    dw2_b = params["dw2_b"].reshape(-1).astype(f32)   # (32,)
    pw2_w = params["pw2_w"].astype(f32)               # (64, 32)
    pw2_b = params["pw2_b"].reshape(-1).astype(f32)   # (64,)
    fc1_w = params["fc1_w"].astype(f32)               # (64, 64)
    fc1_b = params["fc1_b"].reshape(-1).astype(f32)
    fc2_w = params["fc2_w"].astype(f32)               # (class_num, 64)
    fc2_b = params["fc2_b"].reshape(-1).astype(f32)

    C0 = pw1_w.shape[1]
    C0p = _round_up(C0, 8)        # channels padded to a full f32 sublane tile
    M1 = 32 * L1                  # layer-1 fused output rows (time-major blocks of 32)
    KW1 = W * C0p                 # layer-1 fused contraction depth (im2col over the window)

    # --- SepConv1d #1: pointwise(depthwise(x)) is linear -> fold into one matmul.
    # Output block l (rows l*32:(l+1)*32) reads input time idx = l*S1 + k - P1 for tap k.
    W1 = jnp.zeros((M1, KW1), f32)
    for l in range(L1):
        for k in range(K1):
            idx = l * S1 + k - P1
            if 0 <= idx < W:                           # zero padding -> skip tap
                W1 = W1.at[l * 32:(l + 1) * 32, idx * C0p:idx * C0p + C0].set(
                    pw1_w * dw1_w[:, k][None, :])
    B1 = jnp.tile(pw1_w @ dw1_b + pw1_b, L1)           # (M1,) position-independent fused bias

    # --- SepConv1d #2: single output position (L2 == 1); stack the L1 time blocks on the
    # contraction axis -> one (64, 32*L1) matmul.
    W2 = jnp.zeros((64, M1), f32)
    for k in range(K2):
        idx = k - P2                                   # input time position read by tap k
        if 0 <= idx < L1:
            W2 = W2.at[:, idx * 32:(idx + 1) * 32].set(pw2_w * dw2_w[:, k][None, :])
    B2 = pw2_w @ dw2_b + pw2_b                         # (64,)

    # --- pack weights (bf16: consumed only by the MXU, so no precision change vs. the
    # previous in-kernel bf16 cast; removes per-step casts and halves weight DMA/VMEM) ---
    wdt = jnp.bfloat16 if use_bf16 else f32
    off = {"w1": 0, "w2": _round_up(M1, 16)}           # 16-row offsets: bf16 sublane tile
    off["fc1"] = off["w2"] + 64
    off["fc2"] = off["fc1"] + 64
    w_rows = off["fc2"] + _round_up(class_num, 16)
    w_cols = _round_up(max(KW1, M1, 64), 128)
    wslab = jnp.zeros((w_rows, w_cols), f32)
    wslab = wslab.at[off["w1"]:off["w1"] + M1, 0:KW1].set(W1)
    wslab = wslab.at[off["w2"]:off["w2"] + 64, 0:M1].set(W2)
    wslab = wslab.at[off["fc1"]:off["fc1"] + 64, 0:64].set(fc1_w)
    wslab = wslab.at[off["fc2"]:off["fc2"] + class_num, 0:64].set(fc2_w)
    wslab = wslab.astype(wdt)

    # --- pack fused biases (f32, column 0 of a tiny slab; added to f32 accumulators) ---
    off["b1"] = 0
    off["b2"] = off["b1"] + M1
    off["b3"] = off["b2"] + 64
    off["b4"] = off["b3"] + 64
    b_rows = off["b4"] + _round_up(class_num, 8)
    bslab = jnp.zeros((b_rows, 128), f32)
    bslab = bslab.at[off["b1"]:off["b1"] + M1, 0].set(B1)
    bslab = bslab.at[off["b2"]:off["b2"] + 64, 0].set(B2)
    bslab = bslab.at[off["b3"]:off["b3"] + 64, 0].set(fc1_b)
    bslab = bslab.at[off["b4"]:off["b4"] + class_num, 0].set(fc2_b)

    dims = dict(L1=L1, M1=M1, KW1=KW1, C0p=C0p, C0=C0)
    return wslab, bslab, off, dims


def make_kernel(window, C0p, L1, class_num, off, use_bf16, bf16_epilogue):
    W = window
    M1, KW1 = 32 * L1, W * C0p
    cdt = jnp.bfloat16 if use_bf16 else jnp.float32
    bf16_epi = bool(use_bf16 and bf16_epilogue)

    def kernel(x_ref, w_ref, b_ref, out_ref):
        # ---- VMEM-resident fused weights / biases: static slices (free) ----
        w1 = w_ref[off["w1"]:off["w1"] + M1, 0:KW1]          # (32*L1, W*C0p)
        w2 = w_ref[off["w2"]:off["w2"] + 64, 0:M1]           # (64, 32*L1)
        w3 = w_ref[off["fc1"]:off["fc1"] + 64, 0:64]         # (64, 64)
        w4 = w_ref[off["fc2"]:off["fc2"] + class_num, 0:64]  # (class_num, 64)
        b1 = b_ref[off["b1"]:off["b1"] + M1, 0:1]            # (M1, 1) f32
        b2 = b_ref[off["b2"]:off["b2"] + 64, 0:1]
        b3 = b_ref[off["b3"]:off["b3"] + 64, 0:1]
        b4 = b_ref[off["b4"]:off["b4"] + class_num, 0:1]

        # ---- F.normalize(x, dim=1): L2 over channels per (time, sample) column ----
        x = x_ref[...]                                       # (W, C0p, Bb) f32
        Bb = x.shape[2]
        ss = jnp.sum(x * x, axis=1, keepdims=True)           # (W, 1, Bb)
        xn = x * jax.lax.rsqrt(jnp.maximum(ss, 1e-24))       # == x / max(||x||, 1e-12)
        xn = xn.reshape(KW1, Bb).astype(cdt)                 # free merge (C0p == sublane tile)

        def layer(w, b, h):
            # MXU matmul (f32 accumulate) -> fused bias -> ReLU -> dtype for next matmul.
            acc = jnp.dot(w, h, preferred_element_type=jnp.float32)
            if bf16_epi:   # v6e/v7x bf16 VALU: packed epilogue, half the elementwise work
                return jnp.maximum(acc.astype(cdt) + b.astype(cdt), 0.0)
            return jnp.maximum(acc + b, 0.0).astype(cdt)

        # TODO(synk): nn.Dropout layers are eval-mode identity (no RNG masking).
        h = layer(w1, b1, xn)   # SepConv1d#1 (dw+pw fused, all L1 positions)  -> (32*L1, Bb)
        h = layer(w2, b2, h)    # SepConv1d#2 (dw+pw fused, L2 == 1)           -> (64, Bb)
        h = layer(w3, b3, h)    # Flatten -> Linear(64, 64) -> ReLU            -> (64, Bb)

        # out head: Linear(64, class_num) -> ReLU, f32 lane-dense store.
        acc = jnp.dot(w4, h, preferred_element_type=jnp.float32)
        out_ref[...] = jnp.maximum(acc + b4, 0.0)            # (class_num, Bb)

    return kernel


def single_cmdb_mlp_forward(x_wcb, params, class_num, *, block_b=2048,
                            use_bf16=True, bf16_epilogue=None):
    """Batched SingleCMDB_MLP forward.

    x_wcb: (window, C0p, B) f32, batch-last, channels zero-padded to a multiple of 8 — one
    gathered slice data[t:t+window, cmdb_idx] per (cmdb_id, timestamp) query.
    Returns (B, class_num) f32.
    """
    W, C0p, B = x_wcb.shape
    if bf16_epilogue is None:
        bf16_epilogue = _bf16_valu_available()

    # NOTE: in production pack_params would be computed once and reused across calls.
    wslab, bslab, off, dims = pack_params(params, W, class_num, use_bf16)
    assert C0p == dims["C0p"], "channel axis must be zero-padded to a multiple of 8"
    L1 = dims["L1"]

    # ---- batch tiling: lane-dense blocks (multiple of 128), big enough to amortize the
    # ~0.35us/step pipeline overhead, but keep >= 2 steps when possible (v7x megacore). ----
    grid_b = max(128, min(int(block_b) // 128 * 128, 8192))
    grid_b = min(grid_b, pl.cdiv(B, 128) * 128)
    if pl.cdiv(B, grid_b) < 2 and B > 128:
        grid_b = max(128, pl.cdiv(B, 2 * 128) * 128)
    b_pad = pl.cdiv(B, grid_b) * grid_b

    x = x_wcb.astype(jnp.float32)
    if b_pad != B:
        x = jnp.pad(x, ((0, 0), (0, 0), (0, b_pad - B)))     # lane pad only; no transpose
    # TODO(synk): the (cmdb_id -> cmdb_idx, timestamp) gather could move in-kernel via
    # PrefetchScalarGridSpec scalar prefetch + manual DMA so it pipelines under compute.

    kernel = make_kernel(W, C0p, L1, class_num, off, use_bf16, bf16_epilogue)

    cp = dict(dimension_semantics=("parallel",))             # shard batch across TCs (v7x)
    if grid_b > 2048:
        cp["vmem_limit_bytes"] = 48 * 1024 * 1024            # headroom for very large blocks

    out = pl.pallas_call(
        kernel,
        out_shape=jax.ShapeDtypeStruct((class_num, b_pad), jnp.float32),
        grid_spec=pltpu.PrefetchScalarGridSpec(
            num_scalar_prefetch=0,
            grid=(b_pad // grid_b,),
            in_specs=[
                pl.BlockSpec((W, C0p, grid_b), lambda i: (0, 0, i)),  # activations per step
                pl.BlockSpec(wslab.shape, lambda i: (0, 0)),          # fused weights: 1 DMA
                pl.BlockSpec(bslab.shape, lambda i: (0, 0)),          # fused biases:  1 DMA
            ],
            out_specs=pl.BlockSpec((class_num, grid_b), lambda i: (0, i)),
        ),
        compiler_params=pltpu.CompilerParams(**cp),
    )(x, wslab, bslab)

    return jnp.transpose(out[:, :B])                          # (B, class_num)


def reference_forward(x_bwc, params):
    """Pure-JAX f32 reference matching the PyTorch module (eval mode)."""
    x = jnp.transpose(x_bwc, (0, 2, 1)).astype(jnp.float32)   # (B, C, W)
    n = jnp.sqrt(jnp.sum(x * x, axis=1, keepdims=True))
    x = x / jnp.maximum(n, 1e-12)

    def dw(h, w, b, stride, pad):
        out = jax.lax.conv_general_dilated(
            h, w[:, None, :], window_strides=(stride,), padding=[(pad, pad)],
            dimension_numbers=("NCH", "OIH", "NCH"), feature_group_count=h.shape[1])
        return out + b.reshape(1, -1, 1)

    def pw(h, w, b):
        return jnp.einsum("oc,bcl->bol", w, h) + b.reshape(1, -1, 1)

    h = jnp.maximum(pw(dw(x, params["dw1_w"], params["dw1_b"], 2, 3),
                       params["pw1_w"], params["pw1_b"]), 0.0)
    h = jnp.maximum(pw(dw(h, params["dw2_w"], params["dw2_b"], 4, 2),
                       params["pw2_w"], params["pw2_b"]), 0.0)
    h = h.reshape(h.shape[0], -1)                             # Flatten
    h = jnp.maximum(h @ params["fc1_w"].T + params["fc1_b"].reshape(1, -1), 0.0)
    h = jnp.maximum(h @ params["fc2_w"].T + params["fc2_b"].reshape(1, -1), 0.0)
    return h


if __name__ == "__main__":
    key = jax.random.PRNGKey(0)

    # Small synthetic shapes consistent with the module.
    T, metric_num, kpi_num = 256, 10, 6
    window, class_num = 8, 5
    B = 200                               # batch of (cmdb_id, timestamp) queries

    keys = jax.random.split(key, 16)

    # Basic.__init__: data = F.pad(nan_to_num(data), (0, 1)) -> append zero metric column
    data = jax.random.normal(keys[0], (T, metric_num), jnp.float32)
    data_padded = jnp.pad(data, ((0, 0), (0, 1)))

    # cmdb_idx for the chosen cmdb_id: one (cmdb, kpi) pair is missing -> zero column index.
    cmdb_idx = jnp.array([3, 7, metric_num, 0, 5, 9], dtype=jnp.int32)
    assert cmdb_idx.shape[0] == kpi_num

    # Pad the gather index list with the zero "missing KPI" column: channels padded to 8
    # for free at gather time (zero channels don't change normalize or the fused matmuls).
    kpi_pad = _round_up(kpi_num, 8)
    cmdb_idx_pad = jnp.concatenate(
        [cmdb_idx, jnp.full((kpi_pad - kpi_num,), metric_num, jnp.int32)])

    # get_kpi_at_time: t = int(timestamp + 0.5); data[t:t+window, cmdb_idx]  (plain-JAX glue)
    ts = jax.random.randint(keys[13], (B,), 0, T - window)

    def gather_window(t):
        sl = jax.lax.dynamic_slice_in_dim(data_padded, t, window, axis=0)  # (W, metric+1)
        return jnp.take(sl, cmdb_idx_pad, axis=1)                          # (W, kpi_pad)

    # Batch-last layout straight out of the gather: (W, C0p, B) — no wrapper transpose.
    x_wcb = jax.vmap(gather_window, out_axes=-1)(ts)

    # Deterministic parameter init (PyTorch-style uniform(-1/sqrt(fan_in), 1/sqrt(fan_in))).
    def u(k, shape, fan_in):
        bound = 1.0 / (fan_in ** 0.5)
        return jax.random.uniform(k, shape, jnp.float32, -bound, bound)

    params = {
        # depthwise Conv1d(kpi_num, kpi_num, 8, groups=kpi_num): weight (C,1,8) -> (C,8)
        "dw1_w": u(keys[1], (kpi_num, 8), 8),        "dw1_b": u(keys[2], (kpi_num, 1), 8),
        # pointwise Conv1d(kpi_num, 32, 1): weight (32,C,1) -> (32,C)
        "pw1_w": u(keys[3], (32, kpi_num), kpi_num), "pw1_b": u(keys[4], (32, 1), kpi_num),
        "dw2_w": u(keys[5], (32, 8), 8),             "dw2_b": u(keys[6], (32, 1), 8),
        "pw2_w": u(keys[7], (64, 32), 32),           "pw2_b": u(keys[8], (64, 1), 32),
        # Linear weights kept in PyTorch (out, in) layout.
        "fc1_w": u(keys[9], (64, 64), 64),           "fc1_b": u(keys[10], (64, 1), 64),
        "fc2_w": u(keys[11], (class_num, 64), 64),   "fc2_b": u(keys[12], (class_num, 1), 64),
    }

    out = single_cmdb_mlp_forward(x_wcb, params, class_num, block_b=2048)
    out = jax.block_until_ready(out)
    assert out.shape == (B, class_num)

    # Reference uses the real (unpadded) channels only.
    x_bwc = jnp.transpose(x_wcb[:, :kpi_num, :], (2, 0, 1))                 # (B, W, kpi_num)
    ref = reference_forward(x_bwc, params)
    err = float(jnp.max(jnp.abs(out - ref)))
    assert err < 5e-2, f"max abs err vs reference: {err}"

    print("KERNEL_OK")
</pallas_src>

<mosaic_0001>
module attributes {stable_mosaic.version = 11 : i64} {
  func.func @kernel(%arg0: i32, %arg1: memref<8x8x128xf32, #tpu.memory_space<vmem>>, %arg2: memref<272x128xbf16, #tpu.memory_space<vmem>>, %arg3: memref<264x128xf32, #tpu.memory_space<vmem>>, %arg4: memref<5x128xf32, #tpu.memory_space<vmem>>) attributes {dimension_semantics = [#tpu.dimension_semantics<parallel>], iteration_bounds = array<i64: 2>, scalar_prefetch = 0 : i64, scratch_operands = 0 : i64, tpu.core_type = #tpu.core_type<tc>, window_params = [{transform_indices = @transform_0, window_bounds = array<i64: 8, 8, 128>}, {pipeline_mode = #tpu.pipeline_mode<synchronous>, transform_indices = @transform_1, window_bounds = array<i64: 272, 128>}, {pipeline_mode = #tpu.pipeline_mode<synchronous>, transform_indices = @transform_2, window_bounds = array<i64: 264, 128>}, {transform_indices = @transform_3, window_bounds = array<i64: 5, 128>}]} {
    %c0 = arith.constant 0 : index
    %c0_0 = arith.constant 0 : index
    %0 = vector.load %arg2[%c0, %c0_0] : memref<272x128xbf16, #tpu.memory_space<vmem>>, vector<128x64xbf16>
    %c128 = arith.constant 128 : index
    %c0_1 = arith.constant 0 : index
    %1 = vector.load %arg2[%c128, %c0_1] : memref<272x128xbf16, #tpu.memory_space<vmem>>, vector<64x128xbf16>
    %c192 = arith.constant 192 : index
    %c0_2 = arith.constant 0 : index
    %2 = vector.load %arg2[%c192, %c0_2] : memref<272x128xbf16, #tpu.memory_space<vmem>>, vector<64x64xbf16>
    %c256 = arith.constant 256 : index
    %c0_3 = arith.constant 0 : index
    %3 = vector.load %arg2[%c256, %c0_3] : memref<272x128xbf16, #tpu.memory_space<vmem>>, vector<5x64xbf16>
    %c0_4 = arith.constant 0 : index
    %c0_5 = arith.constant 0 : index
    %4 = vector.load %arg3[%c0_4, %c0_5] : memref<264x128xf32, #tpu.memory_space<vmem>>, vector<128x1xf32>
    %c128_6 = arith.constant 128 : index
    %c0_7 = arith.constant 0 : index
    %5 = vector.load %arg3[%c128_6, %c0_7] : memref<264x128xf32, #tpu.memory_space<vmem>>, vector<64x1xf32>
    %c192_8 = arith.constant 192 : index
    %c0_9 = arith.constant 0 : index
    %6 = vector.load %arg3[%c192_8, %c0_9] : memref<264x128xf32, #tpu.memory_space<vmem>>, vector<64x1xf32>
    %c256_10 = arith.constant 256 : index
    %c0_11 = arith.constant 0 : index
    %7 = vector.load %arg3[%c256_10, %c0_11] : memref<264x128xf32, #tpu.memory_space<vmem>>, vector<5x1xf32>
    %c0_12 = arith.constant 0 : index
    %c0_13 = arith.constant 0 : index
    %c0_14 = arith.constant 0 : index
    %8 = vector.load %arg1[%c0_12, %c0_13, %c0_14] : memref<8x8x128xf32, #tpu.memory_space<vmem>>, vector<8x8x128xf32>
    %9 = arith.mulf %8, %8 : vector<8x8x128xf32>
    %cst = arith.constant dense<0.000000e+00> : vector<8x128xf32>
    %10 = vector.multi_reduction <add>, %9, %cst [1] : vector<8x8x128xf32> to vector<8x128xf32>
    %11 = vector.shape_cast %10 : vector<8x128xf32> to vector<8x1x128xf32>
    %cst_15 = arith.constant 1.000000e-24 : f32
    %12 = vector.broadcast %cst_15 : f32 to vector<8x1x128xf32>
    %13 = arith.maximumf %11, %12 : vector<8x1x128xf32>
    %14 = math.rsqrt %13 : vector<8x1x128xf32>
    %15 = vector.broadcast %14 : vector<8x1x128xf32> to vector<8x8x128xf32>
    %16 = arith.mulf %8, %15 : vector<8x8x128xf32>
    %17 = vector.shape_cast %16 : vector<8x8x128xf32> to vector<64x128xf32>
    %18 = arith.truncf %17 : vector<64x128xf32> to vector<64x128xbf16>
    %cst_16 = arith.constant dense<0.000000e+00> : vector<128x128xf32>
    %19 = tpu.matmul %0, %18, %cst_16 {dimension_numbers = #tpu.dot_dimension_numbers<[1], [0], [0], [1], [0, 0, 1, 1], [], []>} : vector<128x64xbf16>, vector<64x128xbf16>, vector<128x128xf32> -> vector<128x128xf32>
    %20 = arith.truncf %19 : vector<128x128xf32> to vector<128x128xbf16>
    %21 = arith.truncf %4 : vector<128x1xf32> to vector<128x1xbf16>
    %22 = vector.broadcast %21 : vector<128x1xbf16> to vector<128x128xbf16>
    %23 = arith.addf %20, %22 : vector<128x128xbf16>
    %cst_17 = arith.constant 0.000000e+00 : bf16
    %24 = vector.broadcast %cst_17 : bf16 to vector<128x128xbf16>
    %25 = arith.maximumf %23, %24 : vector<128x128xbf16>
    %cst_18 = arith.constant dense<0.000000e+00> : vector<64x128xf32>
    %26 = tpu.matmul %1, %25, %cst_18 {dimension_numbers = #tpu.dot_dimension_numbers<[1], [0], [0], [1], [0, 0, 1, 1], [], []>} : vector<64x128xbf16>, vector<128x128xbf16>, vector<64x128xf32> -> vector<64x128xf32>
    %27 = arith.truncf %26 : vector<64x128xf32> to vector<64x128xbf16>
    %28 = arith.truncf %5 : vector<64x1xf32> to vector<64x1xbf16>
    %29 = vector.broadcast %28 : vector<64x1xbf16> to vector<64x128xbf16>
    %30 = arith.addf %27, %29 : vector<64x128xbf16>
    %cst_19 = arith.constant 0.000000e+00 : bf16
    %31 = vector.broadcast %cst_19 : bf16 to vector<64x128xbf16>
    %32 = arith.maximumf %30, %31 : vector<64x128xbf16>
    %cst_20 = arith.constant dense<0.000000e+00> : vector<64x128xf32>
    %33 = tpu.matmul %2, %32, %cst_20 {dimension_numbers = #tpu.dot_dimension_numbers<[1], [0], [0], [1], [0, 0, 1, 1], [], []>} : vector<64x64xbf16>, vector<64x128xbf16>, vector<64x128xf32> -> vector<64x128xf32>
    %34 = arith.truncf %33 : vector<64x128xf32> to vector<64x128xbf16>
    %35 = arith.truncf %6 : vector<64x1xf32> to vector<64x1xbf16>
    %36 = vector.broadcast %35 : vector<64x1xbf16> to vector<64x128xbf16>
    %37 = arith.addf %34, %36 : vector<64x128xbf16>
    %cst_21 = arith.constant 0.000000e+00 : bf16
    %38 = vector.broadcast %cst_21 : bf16 to vector<64x128xbf16>
    %39 = arith.maximumf %37, %38 : vector<64x128xbf16>
    %cst_22 = arith.constant dense<0.000000e+00> : vector<5x128xf32>
    %40 = tpu.matmul %3, %39, %cst_22 {dimension_numbers = #tpu.dot_dimension_numbers<[1], [0], [0], [1], [0, 0, 1, 1], [], []>} : vector<5x64xbf16>, vector<64x128xbf16>, vector<5x128xf32> -> vector<5x128xf32>
    %41 = vector.broadcast %7 : vector<5x1xf32> to vector<5x128xf32>
    %42 = arith.addf %40, %41 : vector<5x128xf32>
    %cst_23 = arith.constant 0.000000e+00 : f32
    %43 = vector.broadcast %cst_23 : f32 to vector<5x128xf32>
    %44 = arith.maximumf %42, %43 : vector<5x128xf32>
    %c0_24 = arith.constant 0 : index
    %c0_25 = arith.constant 0 : index
    %45 = vector.load %arg4[%c0_24, %c0_25] : memref<5x128xf32, #tpu.memory_space<vmem>>, vector<5x128xf32>
    tpu.vector_store %arg4[%c0_24, %c0_25], %44 {strides = array<i32>} : memref<5x128xf32, #tpu.memory_space<vmem>>, vector<5x128xf32>,
    return
  }
  func.func @transform_0(%arg0: i32) -> (i32, i32, i32) {
    %c0_i32 = arith.constant 0 : i32
    %c0_i32_0 = arith.constant 0 : i32
    %c0_i32_1 = arith.constant 0 : i32
    return %c0_i32, %c0_i32_0, %arg0 : i32, i32, i32
  }
  func.func @transform_1(%arg0: i32) -> (i32, i32) {
    %c0_i32 = arith.constant 0 : i32
    %c0_i32_0 = arith.constant 0 : i32
    %c0_i32_1 = arith.constant 0 : i32
    return %c0_i32, %c0_i32_0 : i32, i32
  }
  func.func @transform_2(%arg0: i32) -> (i32, i32) {
    %c0_i32 = arith.constant 0 : i32
    %c0_i32_0 = arith.constant 0 : i32
    %c0_i32_1 = arith.constant 0 : i32
    return %c0_i32, %c0_i32_0 : i32, i32
  }
  func.func @transform_3(%arg0: i32) -> (i32, i32) {
    %c0_i32 = arith.constant 0 : i32
    %c0_i32_0 = arith.constant 0 : i32
    return %c0_i32, %arg0 : i32, i32
  }
}

</mosaic_0001>

<bundles_post_ra>
// kernel: tpu_custom_call.1
= control target key start
LH: loop header
LB: loop body
LE: loop exit
PB: predicated region body
PF: predicated region fallthrough
CT: control target
= control target key end

     0   :  { %8 = vsyncpa [#allocation3], 0  ;;  %s1779_s0 = inlined_call_operand.hbm [shape: f32[8,8,256], index: 0, kind: input, shape index: {}]   ;;  %s1780_s1 = inlined_call_operand.hbm [shape: bf16[272,128], index: 1, kind: input, shape index: {}]   ;;  %s1781_s2 = inlined_call_operand.hbm [shape: f32[264,128], index: 2, kind: input, shape index: {}]   ;;  %s1782_s3 = inlined_call_operand.hbm [shape: f32[5,256], index: 3, kind: output, shape index: {}]  }
   0x1   :  { %10 = vsyncpa [#allocation3 + $0x1], 0 }
   0x2   :  { %11 = vsyncpa [#allocation6], 0 }
   0x3   :  { %12 = vsyncpa [#allocation4], 0 }
   0x4   :  { %14 = vsyncpa [#allocation4 + $0x1], 0  ;;  %s1478_s12 = smov 0   ;;  %s1480_s13 = smov 0  }
   0x5   :  { %s1482_s14 = smov 0   ;;  %s1484_s15 = smov 0  }
   0x6 LB: > { %s1499_s16 = sadd.s32 4294967295, %s1444_s15   ;;  %s1021_s17 = sadd.s32 4294967294, %s1444_s15   ;;  %s1444_s15 = sphi %s1484_s15, %s1808_s15   ;;  %s1440_s14 = sphi %s1482_s14, %s1807_s14   ;;  %s1436_s13 = sphi %s1480_s13, %s1806_s13   ;;  %s1432_s12 = sphi %s1478_s12, %s1805_s12  }
   0x7   : > { %s1503_s18 = sadd.s32 1, %s1444_s15   ;;  %s27_s19 = sadd.s32 1, %s1440_s14 }
   0x8   : > { %s24_s20 = ssub.s32 %s1444_s15, %s1503_s18  ;;  %p34_p0 = scmp.ne.s32.totalorder %s1440_s14, %s1436_s13 }
   0x9   : > { %p25_p1 = scmp.eq.s32.totalorder %s24_s20, 0  ;;  %p35_p2 = scmp.eq.s32.totalorder %s1444_s15, 0 }
   0xa   : > { %p40_p3 = scmp.ne.s32.totalorder %s1436_s13, %s1432_s12  ;;  %p1783_p4 = scmp.eq.s32.totalorder %s1499_s16, 0 }
   0xb   : > { %s1515_s21 = scalar_select %p25_p1, %s1440_s14, %s27_s19  }
   0xc   : > { %p1517_p5 = por %p35_p2, %p34_p0  ;;  %p1523_p6 = por %p1783_p4, %p40_p3 }
   0xd   : > { %p106_p7 = scmp.eq.s32.totalorder %s1499_s16, 1  ;;  %p112_p8 = scmp.eq.s32.totalorder %s1021_s17, 1 }
   0xe   : > { %s1788_s22 = scalar_select %p1517_p5, 1, 0 }
   0xf   : > { %s1789_s23 = scalar_select %p1523_p6, 1, 0 }
  0x10   : > { %p1022_p9 = scmp.ge.s32.totalorder %s1444_s15, 1  ;;  %p119_p10 = scmp.lt.s32.totalorder %s1444_s15, 3 }
  0x11   : > { %p1530_p11 = por %p106_p7, %p34_p0  ;;  %p1534_p12 = por %p112_p8, %p40_p3 }
  0x12   : > { %p1538_p13 = pnand %p1022_p9, %p119_p10  ;;  %s1446_s27 = smov [#allocation5]  }
  0x13   : > { %s1790_s24 = scalar_select %p1530_p11, 1, 0 }
  0x14   : > { %s1791_s25 = scalar_select %p1534_p12, 1, 0 }
  0x15   : > { %s1792_s26 = scalar_select %p1538_p13, 1, 0 }
  0x16   : > { %p1191_p1 = pneg %p1538_p13  ;;  %s131_s28 = sshll.u32 %s1446_s27, 4  ;;  %s132_s28 = int_to_ptr.vmem [resolvable:$true] %s131_s28 }
  0x17   : > { %s1447_s30 = smov [#allocation7]   ;;  %s1288_s7 = scalar_lea.hbm %s1780_s1, 2176 }
  0x18   : > { %p1546_p2 = pnand %p1191_p1, %p1783_p4  ;;  %s144_s4 = sshll.u32 %s1447_s30, 4  ;;  %s145_s4 = int_to_ptr.vmem [resolvable:$true] %s144_s4 }
  0x19   : > { %p1289_p7 = scmp.ne.s32.totalorder %s1780_s1, %s1288_s7  ;;  %p1295_p1 = scmp.lt.u32.totalorder %s1288_s7, %s1780_s1 }
  0x1a   : > { %p1290_p8 = pneg %p1546_p2 }
  0x1c   : > { %p1291_p9 = pnand %p1290_p8, %p1289_p7 }
  0x1e   : > { %p1292_p10 = pneg %p1291_p9 }
  0x20   : > { %p1297_p0 = pnand %p1295_p1, %p1292_p10 }
  0x22   : > { %1300 = shalt.err (!%p1297_p0)
}
  0x23   : > { %s1301_s17 = scalar_lea.vmem %s132_s28, 2176  ;;  %p1309_p11 = scmp.lt.s32.totalorder %s132_s28, %s132_s28 }
  0x24   : > { %p1302_p4 = scmp.ne.s32.totalorder %s132_s28, %s1301_s17  ;;  %p1310_p6 = scmp.lt.s32.totalorder %s1301_s17, %s1301_s17 }
  0x26   : > { %p1304_p3 = pnand %p1302_p4, %p1290_p8  ;;  %p1311_p13 = por %p1310_p6, %p1309_p11 }
  0x28   : > { %p1305_p12 = pneg %p1304_p3 }
  0x2a   : > { %p1312_p5 = pnand %p1311_p13, %p1305_p12 }
  0x2c   : > { %1315 = shalt.err (!%p1312_p5)
}
  0x2d   : > { %s1448_s19 = smov 64   ;;  %s1449_s20 = smov 4  }
  0x2e   : > { %1194 = dma.hbm_to_vmem [thread:$0]  (!%p1546_p2), %s1780_s1, 2176, %s132_s28, [#allocation6], %s1448_s19, %s1448_s19, %s1449_s20  }
  0x2f   : > { %p1794_p0 = scmp.ne.s32.totalorder %s1788_s22, 0  ;;  %p1795_p4 = scmp.lt.s32.totalorder %s1444_s15, 2 }
  0x30   : > { %s158_s6 = sand.u32 1, %s1440_s14   ;;  %s1316_s9 = scalar_lea.hbm %s1781_s2, 4224 }
  0x31   : > { %p1578_p3 = pnand %p1795_p4, %p1794_p0  ;;  %p1317_p5 = scmp.ne.s32.totalorder %s1781_s2, %s1316_s9 }
  0x32   : > { %p1323_p12 = scmp.lt.u32.totalorder %s1316_s9, %s1781_s2 }
  0x33   : > { %s1796_s5 = scalar_select %p1578_p3, 1, 0 }
  0x34   : > { %p1319_p6 = pnand %p1317_p5, %p1290_p8 }
  0x36   : > { %p1320_p11 = pneg %p1319_p6 }
  0x38   : > { %p1325_p13 = pnand %p1323_p12, %p1320_p11 }
  0x3a   : > { %1328 = shalt.err (!%p1325_p13)
}
  0x3b   : > { %s1329_s17 = scalar_lea.vmem %s145_s4, 4224  ;;  %p1337_p1 = scmp.lt.s32.totalorder %s145_s4, %s145_s4 }
  0x3c   : > { %p1330_p7 = scmp.ne.s32.totalorder %s145_s4, %s1329_s17  ;;  %p1338_p0 = scmp.lt.s32.totalorder %s1329_s17, %s1329_s17 }
  0x3e   : > { %p1332_p9 = pnand %p1330_p7, %p1290_p8  ;;  %p1339_p4 = por %p1338_p0, %p1337_p1 }
  0x40   : > { %p1333_p10 = pneg %p1332_p9 }
  0x42   : > { %p1340_p3 = pnand %p1339_p4, %p1333_p10 }
  0x44   : > { %1343 = shalt.err (!%p1340_p3)
}
  0x45   : > { %s1450_s19 = smov 128   ;;  %s1451_s20 = smov 8  }
  0x46   : > { %1197 = dma.hbm_to_vmem [thread:$0]  (!%p1546_p2), %s1781_s2, 4224, %s145_s4, [#allocation6], %s1450_s19, %s1450_s19, %s1451_s20  }
  0x47   : > { %s1026_s7 = sshll.u32 %s158_s6, 6  ;;  %s1027_s8 = sshll.u32 %s1444_s15, 7 }
  0x48   : > { %s1610_s11 = scalar_lea.hbm %s1779_s0, %s1027_s8  ;;  %s162_s22 = scalar_lea.vmem [#allocation2], %s1026_s7 }
  0x49   : > { %s168_s29 = sshll.u32 %s162_s22, 4  ;;  %s1614_s28 = scalar_lea.sflag [#allocation3], %s158_s6  ;;  %s1612_s29 = int_to_ptr.vmem [resolvable:$true] %s168_s29 }
  0x4a   : > { %s1344_s17 = scalar_lea.hbm %s1610_s11, 1024  ;;  %p1797_p2 = scmp.ne.s32.totalorder %s1796_s5, 0 }
  0x4b   : > { %p1345_p8 = scmp.ne.s32.totalorder %s1610_s11, %s1344_s17  ;;  %s1349_s30 = scalar_lea.hbm %s1779_s0, 2048 }
  0x4c   : > { %p1346_p3 = pneg %p1797_p2  ;;  %p1350_p11 = scmp.lt.u32.totalorder %s1610_s11, %s1779_s0 }
  0x4d   : > { %p1351_p12 = scmp.lt.u32.totalorder %s1349_s30, %s1344_s17  ;;  %p1353_p7 = scmp.lt.u32.totalorder %s1344_s17, %s1610_s11 }
  0x4e   : > { %p1347_p5 = pnand %p1346_p3, %p1345_p8 }
  0x4f   : > { %p1352_p13 = por %p1351_p12, %p1350_p11 }
  0x50   : > { %p1348_p6 = pneg %p1347_p5 }
  0x51   : > { %p1354_p9 = por %p1353_p7, %p1352_p13 }
  0x53   : > { %p1355_p10 = pnand %p1354_p9, %p1348_p6 }
  0x55   : > { %1358 = shalt.err (!%p1355_p10)
}
  0x56   : > { %s1359_s6 = scalar_lea.vmem %s1612_s29, 1024  ;;  %s1452_s7 = smov [#allocation2]  }
  0x57   : > { %p1360_p1 = scmp.ne.s32.totalorder %s1612_s29, %s1359_s6  ;;  %s1364_s10 = sshll.u32 %s1452_s7, 4  ;;  %s1365_s10 = int_to_ptr.vmem [resolvable:$false] %s1364_s10 }
  0x58   : > { %s1366_s22 = scalar_lea.vmem %s1365_s10, 2048  ;;  %p1367_p8 = scmp.lt.s32.totalorder %s1612_s29, %s1365_s10 }
  0x59   : > { %p1362_p0 = pnand %p1360_p1, %p1346_p3  ;;  %p1368_p5 = scmp.lt.s32.totalorder %s1366_s22, %s1359_s6 }
  0x5b   : > { %p1363_p4 = pneg %p1362_p0  ;;  %p1369_p11 = por %p1368_p5, %p1367_p8 }
  0x5d   : > { %p1370_p12 = pnand %p1369_p11, %p1363_p4 }
  0x5f   : > { %1373 = shalt.err (!%p1370_p12)
}
  0x60   : > { %s1453_s17 = smov 256   ;;  %p1798_p3 = scmp.ne.s32.totalorder %s1792_s26, 0 }
  0x61   : > { %1201 = dma.hbm_to_vmem [thread:$0]  (!%p1797_p2), %s1610_s11, 1024, %s1612_s29, %s1614_s28, %s1453_s17, %s1450_s19, %s1451_s20  }
  0x62   : > { %180 = sbr.rel (%p1798_p3) target bundleno = 1114 (0x45a), region = 32  ;;  %s1647_s4 = sand.u32 (!%p1798_p3), 1, %s1436_s13  }
  0x63   : > { %s1029_s27 = sshll.u32 (!%p1798_p3), %s1647_s4, 6  ;;  %s183_s30 = scalar_lea.sflag (!%p1798_p3), [#allocation3], %s1647_s4 }
  0x64   : > { %s186_s8 = scalar_lea.vmem (!%p1798_p3), [#allocation2], %s1029_s27  ;;  %p1799_p6 = scmp.ne.s32.totalorder (!%p1798_p3), %s1789_s23, 0 }
  0x69   : > { %1419 = dma.done.wait (%p1799_p6), %s183_s30, 1024  }
  0x6a   : > { %1421 = vsyncadd (%p1799_p6), %s183_s30, 4294966272  ;;  %p1800_p13 = scmp.eq.s32.totalorder %s1499_s16, 0 }
  0x6c   : > { %1423 = dma.done.wait (%p1800_p13), [#allocation6], 6400   ;;  %p1801_p2 = pmov %p1800_p13 }
  0x6d   : > { %v1454_v0 = vmov 0   ;;  %v1661_v1 = vld [vmem:[%s186_s8] sm:$0xff]  ;;  %v1663_v2 = vld [vmem:[%s186_s8 + $0x8] sm:$0xff]  ;;  %v1665_v3 = vld [vmem:[%s186_s8 + $0x10] sm:$0xff]  ;;  %vm416_vm0 = vcmask 523264   ;;  %vm1456_vm1 = vmmov 0  }
  0x6e   : > { %1425 = vsyncadd (%p1801_p2), [#allocation6], 4294960896  ;;  %1254 = vset.pattern.permute.xlu0 %v1454_v0  ;;  %1255 = vset.pattern.permute.xlu1 %v1454_v0  ;;  %v292_v4 = vmul.f32 %v1661_v1, %v1661_v1  ;;  %v293_v5 = vmul.f32 %v1663_v2, %v1663_v2  ;;  %v1671_v6 = vld [vmem:[%s186_s8 + $0x18] sm:$0xff]  ;;  %v294_v7 = vmul.f32 %v1665_v3, %v1665_v3  ;;  %v1675_v8 = vld [vmem:[%s186_s8 + $0x20] sm:$0xff]  ;;  %s1032_s23 = sshll.u32 %s1647_s4, 3  ;;  %s1063_s26 = sshll.u32 %s1499_s16, 7 }
  0x6f   : > { %v1677_v9 = vld [vmem:[%s186_s8 + $0x28] sm:$0xff]  ;;  %v295_v10 = vmul.f32 %v1671_v6, %v1671_v6  ;;  %v296_v11 = vmul.f32 %v1675_v8, %v1675_v8  ;;  %v1685_v13 = vld [vmem:[%s186_s8 + $0x30] sm:$0xff]  ;;  %v1687_v14 = vld [vmem:[%s186_s8 + $0x38] sm:$0xff]  ;;  %s216_s5 = scalar_lea.vmem [#allocation8], %s1032_s23  ;;  %s1735_s29 = scalar_lea.hbm %s1782_s3, %s1063_s26 }
  0x70   : > { %v297_v12 = vmul.f32 %v1677_v9, %v1677_v9  ;;  %v300_v15 = vrot.slane %v292_v4, 4  ;;  %v306_v16 = vrot.slane %v293_v5, 4  ;;  %v312_v17 = vrot.slane %v294_v7, 4  ;;  %v1256_v19 = vld [vmem:[#allocation5] sm:$0xff]   ;;  %s932_s19 = sshll.u32 %s216_s5, 4  ;;  %s919_s28 = scalar_lea.sflag [#allocation4], %s1647_s4  ;;  %s1737_s19 = int_to_ptr.vmem [resolvable:$true] %s932_s19 }
  0x71   : > { %v298_v18 = vmul.f32 %v1685_v13, %v1685_v13  ;;  %v318_v20 = vrot.slane %v295_v10, 4  ;;  %v324_v21 = vrot.slane %v296_v11, 4  ;;  %v299_v23 = vmul.f32 %v1687_v14, %v1687_v14  ;;  %1111 = vmatprep.mubr.msk.bf16.mxu0 %vm416_vm0, %v1256_v19  ;;  %v254_v19 = vld [vmem:[#allocation7 + $0x18] sm:$0xff]  ;;  %s1374_s16 = scalar_lea.vmem %s1737_s19, 128  ;;  %p1802_p9 = scmp.ne.s32.totalorder %s1790_s24, 0 }
  0x72   : > { %v330_v22 = vrot.slane %v297_v12, 4  ;;  %v301_v24 = vadd.f32 %v300_v15, %v292_v4  ;;  %v307_v25 = vadd.f32 %v306_v16, %v293_v5  ;;  %v313_v26 = vadd.f32 %v312_v17, %v294_v7  ;;  %v251_v4 = vld [vmem:[#allocation7] sm:$0xff]  ;;  %v252_v5 = vld [vmem:[#allocation7 + $0x8] sm:$0xff]  ;;  %p1375_p7 = scmp.ne.s32.totalorder %s1737_s19, %s1374_s16  ;;  %s1457_s9 = smov [#allocation8]  }
  0x73   : > { %v336_v27 = vrot.slane %v298_v18, 4  ;;  %v319_v28 = vadd.f32 %v318_v20, %v295_v10  ;;  %v325_v29 = vadd.f32 %v324_v21, %v296_v11  ;;  %v342_v31 = vrot.slane %v299_v23, 4  ;;  %v255_v7 = vld [vmem:[#allocation7 + $0x20] sm:$0xff]  ;;  %s1378_s6 = sshll.u32 %s1457_s9, 4  ;;  %s1379_s6 = int_to_ptr.vmem [resolvable:$false] %s1378_s6 }
  0x74   : > { %v331_v30 = vadd.f32 %v330_v22, %v297_v12  ;;  %v302_v32 = vrot.slane %v301_v24, 2  ;;  %v308_v33 = vrot.slane %v307_v25, 2  ;;  %v314_v34 = vrot.slane %v313_v26, 2  ;;  %v256_v22 = vld [vmem:[#allocation7 + $0x28] sm:$0xff]  ;;  %p1376_p10 = pnand %p1375_p7, %p1802_p9  ;;  %s1380_s7 = scalar_lea.vmem %s1379_s6, 256 }
  0x75   : > { %v337_v35 = vadd.f32 %v336_v27, %v298_v18  ;;  %v320_v36 = vrot.slane %v319_v28, 2  ;;  %v326_v37 = vrot.slane %v325_v29, 2  ;;  %v343_v39 = vadd.f32 %v342_v31, %v299_v23  ;;  %v253_v18 = vld [vmem:[#allocation7 + $0x10] sm:$0xff]  ;;  %v260_v31 = vld [vmem:[#allocation7 + $0x48] sm:$0xff]  ;;  %p1381_p0 = scmp.lt.s32.totalorder %s1737_s19, %s1379_s6  ;;  %p1382_p4 = scmp.lt.s32.totalorder %s1380_s7, %s1374_s16 }
  0x76   : > { %v332_v38 = vrot.slane %v331_v30, 2  ;;  %v303_v40 = vadd.f32 %v302_v32, %v301_v24  ;;  %v309_v41 = vadd.f32 %v308_v33, %v307_v25  ;;  %v315_v42 = vadd.f32 %v314_v34, %v313_v26  ;;  %v257_v25 = vld [vmem:[#allocation7 + $0x30] sm:$0xff]  ;;  %v258_v26 = vld [vmem:[#allocation7 + $0x38] sm:$0xff]  ;;  %p1377_p1 = pneg %p1376_p10 }
  0x77   : > { %v338_v43 = vrot.slane %v337_v35, 2  ;;  %v321_v44 = vadd.f32 %v320_v36, %v319_v28  ;;  %v327_v45 = vadd.f32 %v326_v37, %v325_v29  ;;  %v344_v47 = vrot.slane %v343_v39, 2  ;;  %v261_v33 = vld [vmem:[#allocation7 + $0x50] sm:$0xff]  ;;  %v262_v34 = vld [vmem:[#allocation7 + $0x58] sm:$0xff]  ;;  %v263_v36 = vld [vmem:[#allocation7 + $0x60] sm:$0xff]  ;;  %p1383_p8 = por %p1382_p4, %p1381_p0 }
  0x78   : > { %v333_v46 = vadd.f32 %v332_v38, %v331_v30  ;;  %v304_v48 = vrot.slane %v303_v40, 1  ;;  %v310_v49 = vrot.slane %v309_v41, 1  ;;  %v316_v50 = vrot.slane %v315_v42, 1  ;;  %v259_v30 = vld [vmem:[#allocation7 + $0x40] sm:$0xff]  ;;  %v264_v37 = vld [vmem:[#allocation7 + $0x68] sm:$0xff] }
  0x79   : > { %v339_v51 = vadd.f32 %v338_v43, %v337_v35  ;;  %v322_v52 = vrot.slane %v321_v44, 1  ;;  %v328_v53 = vrot.slane %v327_v45, 1  ;;  %v345_v55 = vadd.f32 %v344_v47, %v343_v39  ;;  %v265_v39 = vld [vmem:[#allocation7 + $0x70] sm:$0xff]  ;;  %p1384_p5 = pnand %p1383_p8, %p1377_p1 }
  0x7a   : > { %v334_v54 = vrot.slane %v333_v46, 1  ;;  %v305_v56 = vadd.f32 %v304_v48, %v303_v40  ;;  %v311_v57 = vadd.f32 %v310_v49, %v309_v41  ;;  %v317_v58 = vadd.f32 %v316_v50, %v315_v42  ;;  %v266_v40 = vld [vmem:[#allocation7 + $0x78] sm:$0xff]  ;;  %v267_v41 = vld [vmem:[#allocation7 + $0x80] sm:$0xff]  ;;  %v268_v42 = vld [vmem:[#allocation7 + $0x88] sm:$0xff] }
  0x7b   : > { %v340_v59 = vrot.slane %v339_v51, 1  ;;  %v323_v60 = vadd.f32 %v322_v52, %v321_v44  ;;  %v329_v61 = vadd.f32 %v328_v53, %v327_v45  ;;  %v346_v63 = vrot.slane %v345_v55, 1  ;;  %v269_v45 = vld [vmem:[#allocation7 + $0x90] sm:$0xff] }
  0x7c   : > { %v335_v62 = vadd.f32 %v334_v54, %v333_v46  ;;  %v348_v10 = vmax.f32 %v305_v56, 1e-24  ;;  %v349_v11 = vmax.f32 %v311_v57, 1e-24  ;;  %v350_v12 = vmax.f32 %v317_v58, 1e-24 }
  0x7d   : > { %v341_v15 = vadd.f32 %v340_v59, %v339_v51  ;;  %v351_v16 = vmax.f32 %v323_v60, 1e-24  ;;  %v347_v17 = vadd.f32 %v346_v63, %v345_v55  ;;  %v352_v20 = vmax.f32 %v329_v61, 1e-24  ;;  %v270_v46 = vld [vmem:[#allocation7 + $0x98] sm:$0xff]  ;;  %v271_v58 = vld [vmem:[#allocation7 + $0xa0] sm:$0xff] }
  0x7e   : > { %1272 = vrsqrt.f32 %v348_v10  ;;  %v546_v21 = vpack.c.bf16 %v252_v5, %v251_v4  ;;  %v353_v23 = vmax.f32 %v335_v62, 1e-24  ;;  %v548_v24 = vpack.c.bf16 %v256_v22, %v255_v7  ;;  %v272_v59 = vld [vmem:[#allocation7 + $0xa8] sm:$0xff]  ;;  %v273_v4 = vld [vmem:[#allocation7 + $0xb0] sm:$0xff] }
  0x7f   : > { %1274 = vrsqrt.f32 %v349_v11  ;;  %v354_v27 = vmax.f32 %v341_v15, 1e-24  ;;  %v547_v28 = vpack.c.bf16 %v254_v19, %v253_v18  ;;  %v355_v29 = vmax.f32 %v347_v17, 1e-24  ;;  %v278_v17 = vld [vmem:[#allocation7 + $0xd8] sm:$0xff]  ;;  %v279_v19 = vld [vmem:[#allocation7 + $0xe0] sm:$0xff] }
  0x80   : > { %1276 = vrsqrt.f32 %v350_v12  ;;  %556 = vperm.xlu0 %1254, %v546_v21   ;;  %566 = vperm.xlu1 %1255, %v548_v24   ;;  %v549_v32 = vpack.c.bf16 %v258_v26, %v257_v25  ;;  %v550_v35 = vpack.c.bf16 %v260_v31, %v259_v30  ;;  %v551_v38 = vpack.c.bf16 %v262_v34, %v261_v33  ;;  %v276_v12 = vld [vmem:[#allocation7 + $0xc8] sm:$0xff]  ;;  %v281_v22 = vld [vmem:[#allocation7 + $0xf0] sm:$0xff]  ;;  %v1257_v24 = vld [vmem:[#allocation5 + $0x8] sm:$0xff]  }
  0x81   : > { %1278 = vrsqrt.f32 %v351_v16  ;;  %v552_v44 = vpack.c.bf16 %v264_v37, %v263_v36  ;;  %v553_v49 = vpack.c.bf16 %v266_v40, %v265_v39  ;;  %v703_v57 = vpack.c.bf16 %v268_v42, %v267_v41  ;;  %v277_v16 = vld [vmem:[#allocation7 + $0xd0] sm:$0xff]  ;;  %v1258_v25 = vld [vmem:[#allocation5 + $0x10] sm:$0xff]   ;;  %v283_v26 = vld [vmem:[#allocation7 + $0x100] sm:$0x1f] }
  0x82   : > { %1280 = vrsqrt.f32 %v352_v20  ;;  %v705_v7 = vpack.c.bf16 %v272_v59, %v271_v58  ;;  %v280_v20 = vld [vmem:[#allocation7 + $0xe8] sm:$0xff]  ;;  %v837_v21 = vpack.c.bf16 %v278_v17, %v277_v16  ;;  %v1263_v31 = vld [vmem:[#allocation5 + $0x38] sm:$0xff]  }
  0x83   : > { %1282 = vrsqrt.f32 %v353_v23  ;;  %v1262_v30 = vld [vmem:[#allocation5 + $0x30] sm:$0xff]  }
  0x84   : > { %1284 = vrsqrt.f32 %v354_v27  ;;  %561 = vperm.xlu0 %1254, %v547_v28   ;;  %571 = vperm.xlu1 %1255, %v549_v32   ;;  %v1259_v27 = vld [vmem:[#allocation5 + $0x18] sm:$0xff]   ;;  %v1260_v28 = vld [vmem:[#allocation5 + $0x20] sm:$0xff]  }
  0x85   : > { %1286 = vrsqrt.f32 %v355_v29  ;;  %v1261_v29 = vld [vmem:[#allocation5 + $0x28] sm:$0xff]   ;;  %v1264_v32 = vld [vmem:[#allocation5 + $0x40] sm:$0xff]  }
  0x86   : > { %1143 = vmatprep.mubr.bf16.mxu1 %v1264_v32 }
  0x88   : > { %v1273_v43 = vpop.eup %1272  ;;  %576 = vperm.xlu0 %1254, %v550_v35   ;;  %581 = vperm.xlu1 %1255, %v551_v38  }
  0x89   : > { %v1275_v47 = vpop.eup %1274  ;;  %v364_v48 = vmul.f32 %v1273_v43, %v1661_v1  ;;  %v704_v1 = vpack.c.bf16 %v270_v46, %v269_v45 }
  0x8a   : > { %v1277_v50 = vpop.eup %1276  ;;  %v365_v51 = vmul.f32 %v1275_v47, %v1663_v2 }
  0x8b   : > { %v1279_v52 = vpop.eup %1278  ;;  %v366_v53 = vmul.f32 %v1277_v50, %v1665_v3  ;;  %v274_v3 = vld [vmem:[#allocation7 + $0xb8] sm:$0xff] }
  0x8c   : > { %v1281_v54 = vpop.eup %1280  ;;  %v372_v55 = vpack.c.bf16 %v365_v51, %v364_v48  ;;  %v367_v56 = vmul.f32 %v1279_v52, %v1671_v6  ;;  %586 = vperm.xlu0 %1254, %v552_v44   ;;  %591 = vperm.xlu1 %1255, %v553_v49   ;;  %v706_v15 = vpack.c.bf16 %v274_v3, %v273_v4 }
  0x8d   : > { %v1283_v60 = vpop.eup %1282  ;;  %v368_v61 = vmul.f32 %v1281_v54, %v1675_v8  ;;  %v275_v8 = vld [vmem:[#allocation7 + $0xc0] sm:$0xff] }
  0x8e   : > { %v1285_v62 = vpop.eup %1284  ;;  %1103 = vmatprep.subr.bf16.mxu0 %v372_v55  ;;  %v373_v63 = vpack.c.bf16 %v367_v56, %v366_v53  ;;  %v369_v2 = vmul.f32 %v1283_v60, %v1677_v9  ;;  %v836_v18 = vpack.c.bf16 %v276_v12, %v275_v8 }
  0x8f   : > { %v1287_v5 = vpop.eup %1286  ;;  %1104 = vmatpush3.bf16.msra.mxu0 %v372_v55  ;;  %v370_v10 = vmul.f32 %v1285_v62, %v1685_v13  ;;  %v282_v13 = vld [vmem:[#allocation7 + $0xf8] sm:$0xff] }
  0x90   : > { %1105 = vmatprep.subr.bf16.mxu0 %v373_v63  ;;  %v374_v6 = vpack.c.bf16 %v369_v2, %v368_v61  ;;  %v371_v11 = vmul.f32 %v1287_v5, %v1687_v14  ;;  %709 = vperm.xlu0 %1254, %v703_v57   ;;  %v838_v14 = vpack.c.bf16 %v280_v20, %v279_v19  ;;  %v1265_v20 = vld [vmem:[#allocation5 + $0x48] sm:$0xff]  }
  0x91   : > { %714 = vperm.xlu1 %1255, %v704_v1   ;;  %v839_v23 = vpack.c.bf16 %v282_v13, %v281_v22  ;;  %v1267_v22 = vld [vmem:[#allocation5 + $0x58] sm:$0xff]   ;;  %v1268_v13 = vld [vmem:[#allocation5 + $0x60] sm:$0xff]  }
  0x92   : > { %v375_v9 = vpack.c.bf16 %v371_v11, %v370_v10 }
  0x93   : > { %1106 = vmatpush3.bf16.msra.mxu0 %v373_v63 }
  0x94   : > { %1107 = vmatprep.subr.bf16.mxu0 %v374_v6  ;;  %719 = vperm.xlu0 %1254, %v705_v7  }
  0x95   : > { %724 = vperm.xlu1 %1255, %v706_v15  }
  0x97   : > { %1108 = vmatpush3.bf16.msra.mxu0 %v374_v6 }
  0x98   : > { %1109 = vmatprep.subr.bf16.mxu0 %v375_v9  ;;  %842 = vperm.xlu0 %1254, %v836_v18  }
  0x99   : > { %847 = vperm.xlu1 %1255, %v837_v21   ;;  %v1266_v21 = vld [vmem:[#allocation5 + $0x50] sm:$0xff]  }
  0x9b   : > { %1110 = vmatpush3.bf16.msra.mxu0 %v375_v9 }
  0x9c   : > { %852 = vperm.xlu0 %1254, %v838_v14  }
  0x9d   : > { %857 = vperm.xlu1 %1255, %v839_v23  }
  0x9e   : > { %1112 = vmatmul.mubr.msk.bf16.vlgmr.msra.gmra.mrb[0].mxu0 %vm416_vm0, %v1257_v24 }
  0x9f   : > { %1115 = vmatprep.mubr.msk.bf16.mxu0 %vm416_vm0, %v1258_v25 }
  0xa0   : > { %870 = vperm.xlu0 %1254, %v283_v26  }
  0xa6   : > { %1116 = vmatmul.mubr.msk.bf16.gmra.mrb[4].mxu0 %vm416_vm0, %v1259_v27 }
  0xa7   : > { %1119 = vmatprep.mubr.msk.bf16.mxu0 %vm416_vm0, %v1260_v28 }
  0xae   : > { %1120 = vmatmul.mubr.msk.bf16.gmra.mrb[8].mxu0 %vm416_vm0, %v1261_v29 }
  0xaf   : > { %1123 = vmatprep.mubr.msk.bf16.mxu0 %vm416_vm0, %v1262_v30 }
  0xb6   : > { %1124 = vmatmul.mubr.msk.bf16.gmra.mrb[12].mxu0 %vm416_vm0, %v1263_v31 }
  0xb7   : > { %1159 = vmatprep.mubr.msk.bf16.mxu0 %vm416_vm0, %v1268_v13 }
  0xff   : > { %v557_v33 = vpop.permute.xlu0 %556  ;;  %v567_v43 = vpop.permute.xlu1 %566 }
 0x103   : > { %v562_v40 = vpop.permute.xlu0 %561  ;;  %v572_v52 = vpop.permute.xlu1 %571 }
 0x107   : > { %v577_v62 = vpop.permute.xlu0 %576  ;;  %v582_v63 = vpop.permute.xlu1 %581 }
 0x10b   : > { %v587_v15 = vpop.permute.xlu0 %586  ;;  %v592_v16 = vpop.permute.xlu1 %591 }
 0x10f   : > { %v710_v28 = vpop.permute.xlu0 %709 }
 0x110   : > { %v715_v29 = vpop.permute.xlu1 %714 }
 0x171   : > { %v1113_v34 = vpop.f32.mrb[0].mxu0 }
 0x172   : > { %v475_v35 = vpop.f32.mrb[1].mxu0 }
 0x173   : > { %v1114_v36 = vpop.f32.mrb[2].mxu0 }
 0x174   : > { %v539_v37 = vpack.c.bf16 %v1114_v36, %v1113_v34  ;;  %v478_v38 = vpop.f32.mrb[3].mxu0 }
 0x175   : > { %v538_v39 = vpack.c.bf16 %v478_v38, %v475_v35 }
 0x176   : > { %v595_v41 = vadd.bf16 %v562_v40, %v539_v37  ;;  %v720_v40 = vpop.permute.xlu0 %719 }
 0x177   : > { %v594_v42 = vadd.bf16 %v557_v33, %v538_v39 }
 0x178   : > { %v603_v48 = vmax.bf16 %v1454_v0, %v595_v41  ;;  %v725_v41 = vpop.permute.xlu1 %724 }
 0x179   : > { %v1117_v44 = vpop.f32.mrb[4].mxu0  ;;  %v602_v45 = vmax.bf16 %v1454_v0, %v594_v42 }
 0x17a   : > { %v491_v46 = vpop.f32.mrb[5].mxu0 }
 0x17b   : > { %v1118_v47 = vpop.f32.mrb[6].mxu0  ;;  %1127 = vmatprep.subr.bf16.mxu1 %v602_v45 }
 0x17c   : > { %v541_v49 = vpack.c.bf16 %v1118_v47, %v1117_v44  ;;  %v494_v50 = vpop.f32.mrb[7].mxu0  ;;  %1128 = vmatpush3.bf16.msra.mxu1 %v602_v45  ;;  %v1270_v47 = vld [vmem:[#allocation5 + $0x70] sm:$0xff]  }
 0x17d   : > { %v540_v51 = vpack.c.bf16 %v494_v50, %v491_v46  ;;  %1129 = vmatprep.subr.bf16.mxu1 %v603_v48  ;;  %v1269_v46 = vld [vmem:[#allocation5 + $0x68] sm:$0xff]  }
 0x17e   : > { %v597_v53 = vadd.bf16 %v572_v52, %v541_v49  ;;  %v1455_v49 = vmov 0.0  }
 0x17f   : > { %v596_v54 = vadd.bf16 %v567_v43, %v540_v51 }
 0x180   : > { %1130 = vmatpush3.bf16.msra.mxu1 %v603_v48  ;;  %v605_v59 = vmax.bf16 %v1454_v0, %v597_v53  ;;  %v1271_v48 = vld [vmem:[#allocation5 + $0x78] sm:$0xff]  }
 0x181   : > { %v1121_v55 = vpop.f32.mrb[8].mxu0  ;;  %v604_v56 = vmax.bf16 %v1454_v0, %v596_v54 }
 0x182   : > { %v507_v57 = vpop.f32.mrb[9].mxu0 }
 0x183   : > { %v1122_v58 = vpop.f32.mrb[10].mxu0  ;;  %1131 = vmatprep.subr.bf16.mxu1 %v604_v56 }
 0x184   : > { %v543_v60 = vpack.c.bf16 %v1122_v58, %v1121_v55  ;;  %v510_v61 = vpop.f32.mrb[11].mxu0  ;;  %1132 = vmatpush3.bf16.msra.mxu1 %v604_v56  ;;  %v843_v56 = vpop.permute.xlu0 %842 }
 0x185   : > { %v542_v1 = vpack.c.bf16 %v510_v61, %v507_v57  ;;  %1133 = vmatprep.subr.bf16.mxu1 %v605_v59  ;;  %v848_v58 = vpop.permute.xlu1 %847 }
 0x186   : > { %v599_v2 = vadd.bf16 %v582_v63, %v543_v60 }
 0x187   : > { %v598_v4 = vadd.bf16 %v577_v62, %v542_v1 }
 0x188   : > { %1134 = vmatpush3.bf16.msra.mxu1 %v605_v59  ;;  %v607_v10 = vmax.bf16 %v1454_v0, %v599_v2 }
 0x189   : > { %v1125_v3 = vpop.f32.mrb[12].mxu0  ;;  %v606_v5 = vmax.bf16 %v1454_v0, %v598_v4 }
 0x18a   : > { %v523_v7 = vpop.f32.mrb[13].mxu0 }
 0x18b   : > { %v1126_v6 = vpop.f32.mrb[14].mxu0  ;;  %1135 = vmatprep.subr.bf16.mxu1 %v606_v5 }
 0x18c   : > { %v545_v11 = vpack.c.bf16 %v1126_v6, %v1125_v3  ;;  %v526_v8 = vpop.f32.mrb[15].mxu0  ;;  %1136 = vmatpush3.bf16.msra.mxu1 %v606_v5  ;;  %v853_v5 = vpop.permute.xlu0 %852 }
 0x18d   : > { %v544_v12 = vpack.c.bf16 %v526_v8, %v523_v7  ;;  %1137 = vmatprep.subr.bf16.mxu1 %v607_v10  ;;  %v858_v6 = vpop.permute.xlu1 %857 }
 0x18e   : > { %v601_v17 = vadd.bf16 %v592_v16, %v545_v11 }
 0x18f   : > { %v600_v9 = vadd.bf16 %v587_v15, %v544_v12  ;;  %v250_v12 = vld [vmem:[#allocation5 + $0x80] sm:$0x7] }
 0x190   : > { %1138 = vmatpush3.bf16.msra.mxu1 %v607_v10  ;;  %v609_v19 = vmax.bf16 %v1454_v0, %v601_v17  ;;  %v871_v15 = vpop.permute.xlu0 %870 }
 0x191   : > { %v608_v18 = vmax.bf16 %v1454_v0, %v600_v9 }
 0x193   : > { %1139 = vmatprep.subr.bf16.mxu1 %v608_v18 }
 0x194   : > { %1140 = vmatpush3.bf16.msra.mxu1 %v608_v18 }
 0x195   : > { %1141 = vmatprep.subr.bf16.mxu1 %v609_v19 }
 0x198   : > { %1142 = vmatpush3.bf16.msra.mxu1 %v609_v19 }
 0x199   : > { %1167 = vmatprep.subr.bf16.mxu1 %v1455_v49 }
 0x19b   : > { %1144 = vmatmul.mubr.bf16.vlgmr.msra.gmra.mrb[0].mxu1 %v1265_v20 }
 0x19c   : > { %1147 = vmatprep.mubr.bf16.mxu1 %v1266_v21 }
 0x1a3   : > { %1148 = vmatmul.mubr.bf16.gmra.mrb[4].mxu1 %v1267_v22 }
 0x1a4   : > { %1175 = vmatprep.mubr.msk.bf16.mxu1 %vm1456_vm1, %v1455_v49 }
 0x26e   : > { %v1145_v14 = vpop.f32.mrb[0].mxu1 }
 0x26f   : > { %v668_v23 = vpop.f32.mrb[1].mxu1 }
 0x270   : > { %v1146_v24 = vpop.f32.mrb[2].mxu1 }
 0x271   : > { %v700_v25 = vpack.c.bf16 %v1146_v24, %v1145_v14  ;;  %v671_v26 = vpop.f32.mrb[3].mxu1 }
 0x272   : > { %v699_v27 = vpack.c.bf16 %v671_v26, %v668_v23 }
 0x273   : > { %v728_v30 = vadd.bf16 %v715_v29, %v700_v25 }
 0x274   : > { %v727_v31 = vadd.bf16 %v710_v28, %v699_v27 }
 0x275   : > { %v732_v36 = vmax.bf16 %v1454_v0, %v728_v30 }
 0x276   : > { %v1149_v32 = vpop.f32.mrb[4].mxu1  ;;  %v731_v33 = vmax.bf16 %v1454_v0, %v727_v31 }
 0x277   : > { %v684_v34 = vpop.f32.mrb[5].mxu1 }
 0x278   : > { %v1150_v35 = vpop.f32.mrb[6].mxu1  ;;  %1151 = vmatprep.subr.bf16.mxu0 %v731_v33 }
 0x279   : > { %v702_v37 = vpack.c.bf16 %v1150_v35, %v1149_v32  ;;  %v687_v38 = vpop.f32.mrb[7].mxu1  ;;  %1152 = vmatpush3.bf16.msra.mxu0 %v731_v33 }
 0x27a   : > { %v701_v39 = vpack.c.bf16 %v687_v38, %v684_v34  ;;  %1153 = vmatprep.subr.bf16.mxu0 %v732_v36 }
 0x27b   : > { %v730_v42 = vadd.bf16 %v725_v41, %v702_v37 }
 0x27c   : > { %v729_v43 = vadd.bf16 %v720_v40, %v701_v39 }
 0x27d   : > { %1154 = vmatpush3.bf16.msra.mxu0 %v732_v36  ;;  %v734_v45 = vmax.bf16 %v1454_v0, %v730_v42 }
 0x27e   : > { %v733_v44 = vmax.bf16 %v1454_v0, %v729_v43 }
 0x280   : > { %1155 = vmatprep.subr.bf16.mxu0 %v733_v44 }
 0x281   : > { %1156 = vmatpush3.bf16.msra.mxu0 %v733_v44 }
 0x282   : > { %1157 = vmatprep.subr.bf16.mxu0 %v734_v45 }
 0x285   : > { %1158 = vmatpush3.bf16.msra.mxu0 %v734_v45 }
 0x288   : > { %1160 = vmatmul.mubr.msk.bf16.vlgmr.msra.gmra.mrb[16].mxu0 %vm416_vm0, %v1269_v46 }
 0x289   : > { %1163 = vmatprep.mubr.msk.bf16.mxu0 %vm416_vm0, %v1270_v47 }
 0x290   : > { %1164 = vmatmul.mubr.msk.bf16.gmra.mrb[20].mxu0 %vm416_vm0, %v1271_v48 }
 0x35b   : > { %v1161_v50 = vpop.f32.mrb[16].mxu0 }
 0x35c   : > { %v801_v51 = vpop.f32.mrb[17].mxu0 }
 0x35d   : > { %v1162_v52 = vpop.f32.mrb[18].mxu0 }
 0x35e   : > { %v833_v53 = vpack.c.bf16 %v1162_v52, %v1161_v50  ;;  %v804_v54 = vpop.f32.mrb[19].mxu0 }
 0x35f   : > { %v832_v55 = vpack.c.bf16 %v804_v54, %v801_v51 }
 0x360   : > { %v861_v59 = vadd.bf16 %v848_v58, %v833_v53 }
 0x361   : > { %v860_v57 = vadd.bf16 %v843_v56, %v832_v55 }
 0x362   : > { %v865_v4 = vmax.bf16 %v1454_v0, %v861_v59 }
 0x363   : > { %v864_v60 = vmax.bf16 %v1454_v0, %v860_v57  ;;  %v1165_v61 = vpop.f32.mrb[20].mxu0 }
 0x364   : > { %v817_v1 = vpop.f32.mrb[21].mxu0 }
 0x365   : > { %v1166_v62 = vpop.f32.mrb[22].mxu0  ;;  %1168 = vmatpush3.bf16.msra.mxu1 %v864_v60 }
 0x366   : > { %v835_v63 = vpack.c.bf16 %v1166_v62, %v1165_v61  ;;  %v820_v2 = vpop.f32.mrb[23].mxu0  ;;  %1169 = vmatprep.subr.bf16.mxu1 %v1455_v49 }
 0x367   : > { %v834_v3 = vpack.c.bf16 %v820_v2, %v817_v1 }
 0x368   : > { %v863_v10 = vadd.bf16 %v858_v6, %v835_v63 }
 0x369   : > { %v862_v7 = vadd.bf16 %v853_v5, %v834_v3  ;;  %1170 = vmatpush3.bf16.msra.mxu1 %v865_v4 }
 0x36a   : > { %1171 = vmatprep.subr.bf16.mxu1 %v1455_v49  ;;  %v867_v8 = vmax.bf16 %v1454_v0, %v863_v10 }
 0x36b   : > { %v866_v11 = vmax.bf16 %v1454_v0, %v862_v7 }
 0x36d   : > { %1172 = vmatpush3.bf16.msra.mxu1 %v866_v11 }
 0x36e   : > { %1173 = vmatprep.subr.bf16.mxu1 %v1455_v49 }
 0x371   : > { %1174 = vmatpush3.bf16.msra.mxu1 %v867_v8 }
 0x374   : > { %1176 = vmatmul.mubr.msk.bf16.vlgmr.msra.gmra.mrb[8].mxu1 %vm416_vm0, %v250_v12 }
 0x447   : > { %v910_v16 = vpop.f32.mrb[8].mxu1 }
 0x448   : > { %v911_v17 = vadd.f32 %v910_v16, %v871_v15  ;;  %v1177_v9 = vpop.f32.mrb[9].mxu1 }
 0x449   : > { %v913_v18 = vpop.f32.mrb[10].mxu1 }
 0x44a   : > { %v916_v19 = vmax.f32 %v911_v17, 0.0  ;;  %v1178_v20 = vpop.f32.mrb[11].mxu1 }
 0x44c   : > { %917 = vst [vmem:[%s216_s5] sm:$0x1f] %v916_v19 }
 0x44d   : > { %1387 = shalt.err (!%p1384_p5)
}
 0x44e   : > { %s1388_s10 = scalar_lea.hbm %s1735_s29, 128  ;;  %s1392_s4 = scalar_lea.hbm %s1782_s3, 256 }
 0x44f   : > { %p1389_p11 = scmp.ne.s32.totalorder %s1735_s29, %s1388_s10  ;;  %p1393_p6 = scmp.lt.u32.totalorder %s1735_s29, %s1782_s3 }
 0x450   : > { %p1394_p13 = scmp.lt.u32.totalorder %s1392_s4, %s1388_s10  ;;  %p1396_p7 = scmp.lt.u32.totalorder %s1388_s10, %s1735_s29 }
 0x451   : > { %p1390_p12 = pnand %p1389_p11, %p1802_p9 }
 0x452   : > { %p1395_p2 = por %p1394_p13, %p1393_p6 }
 0x453   : > { %p1391_p3 = pneg %p1390_p12 }
 0x454   : > { %p1397_p10 = por %p1396_p7, %p1395_p2 }
 0x456   : > { %p1398_p1 = pnand %p1397_p10, %p1391_p3 }
 0x458   : > { %1401 = shalt.err (!%p1398_p1)
}
 0x459   : > { %1189 = dma.vmem_to_hbm [thread:$0]  (%p1802_p9), %s1737_s19, 128, %s1735_s29, %s919_s28  }
 0x45a PF: > { %s944_s8 = sand.u32 1, %s1432_s12   ;;  %p1803_p0 = scmp.ne.s32.totalorder %s1791_s25, 0 }
 0x45b   : > { %p1804_p4 = scmp.ge.s32.totalorder %s1444_s15, 2  ;;  %s945_s23 = scalar_lea.sflag [#allocation4], %s944_s8 }
 0x45d   : > { %p1203_p8 = pnand %p1804_p4, %p1803_p0 }
 0x45f   : > { %1427 = dma.done.wait (!%p1203_p8), %s945_s23, 128  }
 0x460   : > { %1429 = vsyncadd (!%p1203_p8), %s945_s23, 4294967168  ;;  %p17_p5 = scmp.ge.s32.totalorder %s1503_s18, 4   ;;  %s1805_s12 = smov %s1436_s13 }
 0x461   : > { %s1806_s13 = smov %s1440_s14  ;;  %s1807_s14 = smov %s1515_s21 }
 0x462   : > { %s1808_s15 = smov %s1503_s18  ;;  %19 = sbr.rel (!%p17_p5) target bundleno = 6 (0x6), region = 85 }
 0x469   :  { %950 = vsyncpa [#allocation3], 1 }
 0x46a   :  { %952 = vsyncpa [#allocation3 + $0x1], 1 }
 0x46b   :  { %953 = vsyncpa [#allocation6], 1 }
 0x46c   :  { %954 = vsyncpa [#allocation4], 1 }
 0x46d   :  { %956 = vsyncpa [#allocation4 + $0x1], 1 }

</bundles_post_ra>
